<compile_context>
chip_gen: v7x
topology: tpu7x:2x2x1
jax: 0.10.0
libtpu: 0.0.40
codegen_flags: <defaults>
</compile_context>

<pallas_src>
import jax
import jax.numpy as jnp
from jax.experimental import pallas as pl
from jax.experimental.pallas import tpu as pltpu

BN_EPS = 1e-5


def _encoder_block_kernel(x_ref,
                          w1_ref, b1_ref, w2_ref, w3_ref,
                          g1_ref, bt1_ref, g2_ref, bt2_ref,
                          o_ref):
    """x_ref: (N, Cin, L) NCL. o_ref: (N, Cout, L-8) NCL. Weights pre-flattened
    to im2col layout (K*Ci, Co); biases/BN params are (1, Cout)."""
    N, Cin, L = x_ref.shape
    Cout = o_ref.shape[1]
    L1 = L - 4          # after conv1 (k=5, valid)
    L2 = L - 8          # after conv2 (k=5, valid); conv3 (k=3, pad=1) keeps L2

    # NCL -> NLC inside VMEM so channels sit on lanes for every matmul.
    x = jnp.transpose(x_ref[...].astype(jnp.float32), (0, 2, 1))   # (N, L, Cin)

    def im2col(h3d, k, lout):
        # h3d: (N, Lh, C) -> (N*lout, k*C); one static slice per tap, single
        # lane-axis concat, then flatten rows onto the sublane axis.
        c = h3d.shape[-1]
        m = jnp.concatenate([h3d[:, t:t + lout, :] for t in range(k)], axis=-1)
        return m.reshape(N * lout, k * c)

    def bn_swish(h2d, g_ref, bt_ref):
        # Train-mode BN (biased variance) folded to scale/shift, then Swish.
        mean = jnp.mean(h2d, axis=0, keepdims=True)                     # (1, Cout)
        var = jnp.mean(jnp.square(h2d - mean), axis=0, keepdims=True)   # (1, Cout)
        scale = g_ref[...] * jax.lax.rsqrt(var + BN_EPS)                # (1, Cout)
        shift = bt_ref[...] - mean * scale                              # (1, Cout)
        y = h2d * scale + shift
        return y * jax.nn.sigmoid(y)

    # conv1: k=5, valid, + bias  -> single MXU push over K*Cin contraction.
    h = jnp.dot(im2col(x, 5, L1), w1_ref[...],
                preferred_element_type=jnp.float32) + b1_ref[...]       # (N*L1, Cout)

    # conv2: k=5, valid. Bias b2 omitted: it cancels exactly in BN1.
    h = jnp.dot(im2col(h.reshape(N, L1, Cout), 5, L2), w2_ref[...],
                preferred_element_type=jnp.float32)                     # (N*L2, Cout)

    h = bn_swish(h, g1_ref, bt1_ref)

    # conv3: k=3, pad=1. Bias b3 omitted: cancels exactly in BN2. The halo is
    # a single zero row per side; im2col slices then cover the boundaries.
    a = h.reshape(N, L2, Cout)
    z = jnp.zeros((N, 1, Cout), jnp.float32)
    a = jnp.concatenate([z, a, z], axis=1)                              # (N, L2+2, Cout)
    h = jnp.dot(im2col(a, 3, L2), w3_ref[...],
                preferred_element_type=jnp.float32)                     # (N*L2, Cout)

    h = bn_swish(h, g2_ref, bt2_ref)

    # NLC -> NCL on the way out (in-VMEM transpose, no wrapper transpose).
    o_ref[...] = jnp.transpose(h.reshape(N, L2, Cout), (0, 2, 1)).astype(o_ref.dtype)


def init_params(key, cin, cout):
    ks = jax.random.split(key, 6)

    def conv_init(k, ci, co, ksize):
        bound = 1.0 / jnp.sqrt(ci * ksize)
        kw, kb = jax.random.split(k)
        w = jax.random.uniform(kw, (co, ci, ksize), jnp.float32, -bound, bound)
        b = jax.random.uniform(kb, (co,), jnp.float32, -bound, bound)
        return w, b

    w1, b1 = conv_init(ks[0], cin, cout, 5)
    w2, b2 = conv_init(ks[1], cout, cout, 5)
    w3, b3 = conv_init(ks[2], cout, cout, 3)
    return dict(
        w1=w1, b1=b1, w2=w2, b2=b2, w3=w3, b3=b3,
        g1=jnp.ones((cout,), jnp.float32), bt1=jnp.zeros((cout,), jnp.float32),
        g2=jnp.ones((cout,), jnp.float32), bt2=jnp.zeros((cout,), jnp.float32),
    )


def encoder_block_forward(x, p):
    """x: (N, Cin, L) float32, NCL like PyTorch Conv1d. Returns (N, Cout, L-8)."""
    N, Cin, L = x.shape
    Cout = p['w1'].shape[0]
    L2 = L - 8

    # Pre-flatten conv weights to im2col layout: W[k*Ci + i, o] = w_torch[o, i, k].
    def im2col_w(w):
        co, ci, k = w.shape
        return jnp.transpose(w, (2, 1, 0)).reshape(k * ci, co)

    args = (x,
            im2col_w(p['w1']), p['b1'].reshape(1, Cout),
            im2col_w(p['w2']), im2col_w(p['w3']),          # b2/b3 cancel in the BNs
            p['g1'].reshape(1, Cout), p['bt1'].reshape(1, Cout),
            p['g2'].reshape(1, Cout), p['bt2'].reshape(1, Cout))

    vmem = pl.BlockSpec(memory_space=pltpu.MemorySpace.VMEM)
    return pl.pallas_call(
        _encoder_block_kernel,
        out_shape=jax.ShapeDtypeStruct((N, Cout, L2), x.dtype),
        in_specs=[vmem] * len(args),
        out_specs=vmem,
        compiler_params=pltpu.CompilerParams(vmem_limit_bytes=32 * 1024 * 1024),
    )(*args)


def _reference_forward(x, p):
    """Pure-JAX reference with the literal PyTorch math (incl. b2/b3, unfolded BN)."""
    def conv1d(h, w, b, pad):      # h: (N, Ci, L), w: (Co, Ci, K)
        Co, Ci, K = w.shape
        if pad > 0:
            h = jnp.pad(h, ((0, 0), (0, 0), (pad, pad)))
        Lout = h.shape[2] - K + 1
        acc = jnp.zeros((h.shape[0], Co, Lout), jnp.float32)
        for k in range(K):
            acc = acc + jnp.einsum('oi,nil->nol', w[:, :, k], h[:, :, k:k + Lout])
        return acc + b[None, :, None]

    def bn(h, g, b):
        mean = jnp.mean(h, axis=(0, 2), keepdims=True)
        var = jnp.mean(jnp.square(h - mean), axis=(0, 2), keepdims=True)
        return (h - mean) / jnp.sqrt(var + BN_EPS) * g[None, :, None] + b[None, :, None]

    def swish(h):
        return h * jax.nn.sigmoid(h)

    h = conv1d(x, p['w1'], p['b1'], 0)
    h = conv1d(h, p['w2'], p['b2'], 0)
    h = swish(bn(h, p['g1'], p['bt1']))
    h = conv1d(h, p['w3'], p['b3'], 1)
    h = swish(bn(h, p['g2'], p['bt2']))
    return h


if __name__ == "__main__":
    channels = [4, 8]          # EncoderBlock(channels): Cin=4, Cout=8
    N, L = 2, 32

    key = jax.random.PRNGKey(0)
    kx, kp = jax.random.split(key)
    x = jax.random.normal(kx, (N, channels[0], L), jnp.float32)
    params = init_params(kp, channels[0], channels[1])

    out = jax.block_until_ready(encoder_block_forward(x, params))
    ref = jax.block_until_ready(_reference_forward(x, params))

    assert out.shape == (N, channels[1], L - 8), out.shape
    assert jnp.all(jnp.isfinite(out))
    assert jnp.allclose(out, ref, rtol=1e-4, atol=1e-4), \
        float(jnp.max(jnp.abs(out - ref)))

    print("KERNEL_OK")
</pallas_src>

<mosaic_0001>
module attributes {stable_mosaic.version = 11 : i64} {
  func.func @_encoder_block_kernel(%arg0: memref<2x4x32xf32, #tpu.memory_space<vmem>>, %arg1: memref<20x8xf32, #tpu.memory_space<vmem>>, %arg2: memref<1x8xf32, #tpu.memory_space<vmem>>, %arg3: memref<40x8xf32, #tpu.memory_space<vmem>>, %arg4: memref<24x8xf32, #tpu.memory_space<vmem>>, %arg5: memref<1x8xf32, #tpu.memory_space<vmem>>, %arg6: memref<1x8xf32, #tpu.memory_space<vmem>>, %arg7: memref<1x8xf32, #tpu.memory_space<vmem>>, %arg8: memref<1x8xf32, #tpu.memory_space<vmem>>, %arg9: memref<2x8x24xf32, #tpu.memory_space<vmem>>) attributes {dimension_semantics = [], scalar_prefetch = 0 : i64, scratch_operands = 0 : i64, tpu.core_type = #tpu.core_type<tc>} {
    %c0 = arith.constant 0 : index
    %c0_0 = arith.constant 0 : index
    %c0_1 = arith.constant 0 : index
    %0 = vector.load %arg0[%c0, %c0_0, %c0_1] : memref<2x4x32xf32, #tpu.memory_space<vmem>>, vector<2x4x32xf32>
    %1 = tpu.transpose %0, [0, 2, 1] : vector<2x4x32xf32> -> vector<2x32x4xf32>
    %2 = vector.extract_strided_slice %1 {offsets = [0, 0, 0], sizes = [2, 28, 4], strides = [1, 1, 1]} : vector<2x32x4xf32> to vector<2x28x4xf32>
    %3 = vector.extract_strided_slice %1 {offsets = [0, 1, 0], sizes = [2, 28, 4], strides = [1, 1, 1]} : vector<2x32x4xf32> to vector<2x28x4xf32>
    %4 = vector.extract_strided_slice %1 {offsets = [0, 2, 0], sizes = [2, 28, 4], strides = [1, 1, 1]} : vector<2x32x4xf32> to vector<2x28x4xf32>
    %5 = vector.extract_strided_slice %1 {offsets = [0, 3, 0], sizes = [2, 28, 4], strides = [1, 1, 1]} : vector<2x32x4xf32> to vector<2x28x4xf32>
    %6 = vector.extract_strided_slice %1 {offsets = [0, 4, 0], sizes = [2, 28, 4], strides = [1, 1, 1]} : vector<2x32x4xf32> to vector<2x28x4xf32>
    %7 = tpu.concatenate %2, %3, %4, %5, %6 in 2 : vector<2x28x4xf32>, vector<2x28x4xf32>, vector<2x28x4xf32>, vector<2x28x4xf32>, vector<2x28x4xf32> -> vector<2x28x20xf32>
    %8 = vector.shape_cast %7 : vector<2x28x20xf32> to vector<56x20xf32>
    %c0_2 = arith.constant 0 : index
    %c0_3 = arith.constant 0 : index
    %9 = vector.load %arg1[%c0_2, %c0_3] : memref<20x8xf32, #tpu.memory_space<vmem>>, vector<20x8xf32>
    %cst = arith.constant dense<0.000000e+00> : vector<56x8xf32>
    %10 = tpu.matmul %8, %9, %cst {dimension_numbers = #tpu.dot_dimension_numbers<[1], [0], [0], [1], [0, 0, 1, 1], [], []>} : vector<56x20xf32>, vector<20x8xf32>, vector<56x8xf32> -> vector<56x8xf32>
    %c0_4 = arith.constant 0 : index
    %c0_5 = arith.constant 0 : index
    %11 = vector.load %arg2[%c0_4, %c0_5] : memref<1x8xf32, #tpu.memory_space<vmem>>, vector<1x8xf32>
    %12 = vector.broadcast %11 : vector<1x8xf32> to vector<56x8xf32>
    %13 = arith.addf %10, %12 : vector<56x8xf32>
    %14 = vector.shape_cast %13 : vector<56x8xf32> to vector<2x28x8xf32>
    %15 = vector.extract_strided_slice %14 {offsets = [0, 0, 0], sizes = [2, 24, 8], strides = [1, 1, 1]} : vector<2x28x8xf32> to vector<2x24x8xf32>
    %16 = vector.extract_strided_slice %14 {offsets = [0, 1, 0], sizes = [2, 24, 8], strides = [1, 1, 1]} : vector<2x28x8xf32> to vector<2x24x8xf32>
    %17 = vector.extract_strided_slice %14 {offsets = [0, 2, 0], sizes = [2, 24, 8], strides = [1, 1, 1]} : vector<2x28x8xf32> to vector<2x24x8xf32>
    %18 = vector.extract_strided_slice %14 {offsets = [0, 3, 0], sizes = [2, 24, 8], strides = [1, 1, 1]} : vector<2x28x8xf32> to vector<2x24x8xf32>
    %19 = vector.extract_strided_slice %14 {offsets = [0, 4, 0], sizes = [2, 24, 8], strides = [1, 1, 1]} : vector<2x28x8xf32> to vector<2x24x8xf32>
    %20 = tpu.concatenate %15, %16, %17, %18, %19 in 2 : vector<2x24x8xf32>, vector<2x24x8xf32>, vector<2x24x8xf32>, vector<2x24x8xf32>, vector<2x24x8xf32> -> vector<2x24x40xf32>
    %21 = vector.shape_cast %20 : vector<2x24x40xf32> to vector<48x40xf32>
    %c0_6 = arith.constant 0 : index
    %c0_7 = arith.constant 0 : index
    %22 = vector.load %arg3[%c0_6, %c0_7] : memref<40x8xf32, #tpu.memory_space<vmem>>, vector<40x8xf32>
    %cst_8 = arith.constant dense<0.000000e+00> : vector<48x8xf32>
    %23 = tpu.matmul %21, %22, %cst_8 {dimension_numbers = #tpu.dot_dimension_numbers<[1], [0], [0], [1], [0, 0, 1, 1], [], []>} : vector<48x40xf32>, vector<40x8xf32>, vector<48x8xf32> -> vector<48x8xf32>
    %cst_9 = arith.constant dense<0.000000e+00> : vector<8xf32>
    %24 = vector.multi_reduction <add>, %23, %cst_9 [0] : vector<48x8xf32> to vector<8xf32>
    %25 = vector.shape_cast %24 : vector<8xf32> to vector<1x8xf32>
    %cst_10 = arith.constant 4.800000e+01 : f32
    %26 = vector.broadcast %cst_10 : f32 to vector<1x8xf32>
    %27 = arith.divf %25, %26 : vector<1x8xf32>
    %28 = vector.broadcast %27 : vector<1x8xf32> to vector<48x8xf32>
    %29 = arith.subf %23, %28 : vector<48x8xf32>
    %30 = arith.mulf %29, %29 : vector<48x8xf32>
    %cst_11 = arith.constant dense<0.000000e+00> : vector<8xf32>
    %31 = vector.multi_reduction <add>, %30, %cst_11 [0] : vector<48x8xf32> to vector<8xf32>
    %32 = vector.shape_cast %31 : vector<8xf32> to vector<1x8xf32>
    %cst_12 = arith.constant 4.800000e+01 : f32
    %33 = vector.broadcast %cst_12 : f32 to vector<1x8xf32>
    %34 = arith.divf %32, %33 : vector<1x8xf32>
    %c0_13 = arith.constant 0 : index
    %c0_14 = arith.constant 0 : index
    %35 = vector.load %arg5[%c0_13, %c0_14] : memref<1x8xf32, #tpu.memory_space<vmem>>, vector<1x8xf32>
    %cst_15 = arith.constant 9.99999974E-6 : f32
    %36 = vector.broadcast %cst_15 : f32 to vector<1x8xf32>
    %37 = arith.addf %34, %36 : vector<1x8xf32>
    %38 = math.rsqrt %37 : vector<1x8xf32>
    %39 = arith.mulf %35, %38 : vector<1x8xf32>
    %c0_16 = arith.constant 0 : index
    %c0_17 = arith.constant 0 : index
    %40 = vector.load %arg6[%c0_16, %c0_17] : memref<1x8xf32, #tpu.memory_space<vmem>>, vector<1x8xf32>
    %41 = arith.mulf %27, %39 : vector<1x8xf32>
    %42 = arith.subf %40, %41 : vector<1x8xf32>
    %43 = vector.broadcast %39 : vector<1x8xf32> to vector<48x8xf32>
    %44 = arith.mulf %23, %43 : vector<48x8xf32>
    %45 = vector.broadcast %42 : vector<1x8xf32> to vector<48x8xf32>
    %46 = arith.addf %44, %45 : vector<48x8xf32>
    %47 = arith.negf %46 : vector<48x8xf32>
    %48 = math.exp %47 : vector<48x8xf32>
    %cst_18 = arith.constant 1.000000e+00 : f32
    %49 = vector.broadcast %cst_18 : f32 to vector<48x8xf32>
    %50 = arith.addf %49, %48 : vector<48x8xf32>
    %51 = arith.divf %49, %50 : vector<48x8xf32>
    %52 = arith.mulf %46, %51 : vector<48x8xf32>
    %53 = vector.shape_cast %52 : vector<48x8xf32> to vector<2x24x8xf32>
    %cst_19 = arith.constant 0.000000e+00 : f32
    %54 = vector.broadcast %cst_19 : f32 to vector<2x1x8xf32>
    %55 = tpu.concatenate %54, %53, %54 in 1 : vector<2x1x8xf32>, vector<2x24x8xf32>, vector<2x1x8xf32> -> vector<2x26x8xf32>
    %56 = vector.extract_strided_slice %55 {offsets = [0, 0, 0], sizes = [2, 24, 8], strides = [1, 1, 1]} : vector<2x26x8xf32> to vector<2x24x8xf32>
    %57 = vector.extract_strided_slice %55 {offsets = [0, 1, 0], sizes = [2, 24, 8], strides = [1, 1, 1]} : vector<2x26x8xf32> to vector<2x24x8xf32>
    %58 = vector.extract_strided_slice %55 {offsets = [0, 2, 0], sizes = [2, 24, 8], strides = [1, 1, 1]} : vector<2x26x8xf32> to vector<2x24x8xf32>
    %59 = tpu.concatenate %56, %57, %58 in 2 : vector<2x24x8xf32>, vector<2x24x8xf32>, vector<2x24x8xf32> -> vector<2x24x24xf32>
    %60 = vector.shape_cast %59 : vector<2x24x24xf32> to vector<48x24xf32>
    %c0_20 = arith.constant 0 : index
    %c0_21 = arith.constant 0 : index
    %61 = vector.load %arg4[%c0_20, %c0_21] : memref<24x8xf32, #tpu.memory_space<vmem>>, vector<24x8xf32>
    %cst_22 = arith.constant dense<0.000000e+00> : vector<48x8xf32>
    %62 = tpu.matmul %60, %61, %cst_22 {dimension_numbers = #tpu.dot_dimension_numbers<[1], [0], [0], [1], [0, 0, 1, 1], [], []>} : vector<48x24xf32>, vector<24x8xf32>, vector<48x8xf32> -> vector<48x8xf32>
    %cst_23 = arith.constant dense<0.000000e+00> : vector<8xf32>
    %63 = vector.multi_reduction <add>, %62, %cst_23 [0] : vector<48x8xf32> to vector<8xf32>
    %64 = vector.shape_cast %63 : vector<8xf32> to vector<1x8xf32>
    %cst_24 = arith.constant 4.800000e+01 : f32
    %65 = vector.broadcast %cst_24 : f32 to vector<1x8xf32>
    %66 = arith.divf %64, %65 : vector<1x8xf32>
    %67 = vector.broadcast %66 : vector<1x8xf32> to vector<48x8xf32>
    %68 = arith.subf %62, %67 : vector<48x8xf32>
    %69 = arith.mulf %68, %68 : vector<48x8xf32>
    %cst_25 = arith.constant dense<0.000000e+00> : vector<8xf32>
    %70 = vector.multi_reduction <add>, %69, %cst_25 [0] : vector<48x8xf32> to vector<8xf32>
    %71 = vector.shape_cast %70 : vector<8xf32> to vector<1x8xf32>
    %cst_26 = arith.constant 4.800000e+01 : f32
    %72 = vector.broadcast %cst_26 : f32 to vector<1x8xf32>
    %73 = arith.divf %71, %72 : vector<1x8xf32>
    %c0_27 = arith.constant 0 : index
    %c0_28 = arith.constant 0 : index
    %74 = vector.load %arg7[%c0_27, %c0_28] : memref<1x8xf32, #tpu.memory_space<vmem>>, vector<1x8xf32>
    %cst_29 = arith.constant 9.99999974E-6 : f32
    %75 = vector.broadcast %cst_29 : f32 to vector<1x8xf32>
    %76 = arith.addf %73, %75 : vector<1x8xf32>
    %77 = math.rsqrt %76 : vector<1x8xf32>
    %78 = arith.mulf %74, %77 : vector<1x8xf32>
    %c0_30 = arith.constant 0 : index
    %c0_31 = arith.constant 0 : index
    %79 = vector.load %arg8[%c0_30, %c0_31] : memref<1x8xf32, #tpu.memory_space<vmem>>, vector<1x8xf32>
    %80 = arith.mulf %66, %78 : vector<1x8xf32>
    %81 = arith.subf %79, %80 : vector<1x8xf32>
    %82 = vector.broadcast %78 : vector<1x8xf32> to vector<48x8xf32>
    %83 = arith.mulf %62, %82 : vector<48x8xf32>
    %84 = vector.broadcast %81 : vector<1x8xf32> to vector<48x8xf32>
    %85 = arith.addf %83, %84 : vector<48x8xf32>
    %86 = arith.negf %85 : vector<48x8xf32>
    %87 = math.exp %86 : vector<48x8xf32>
    %cst_32 = arith.constant 1.000000e+00 : f32
    %88 = vector.broadcast %cst_32 : f32 to vector<48x8xf32>
    %89 = arith.addf %88, %87 : vector<48x8xf32>
    %90 = arith.divf %88, %89 : vector<48x8xf32>
    %91 = arith.mulf %85, %90 : vector<48x8xf32>
    %92 = vector.shape_cast %91 : vector<48x8xf32> to vector<2x24x8xf32>
    %93 = tpu.transpose %92, [0, 2, 1] : vector<2x24x8xf32> -> vector<2x8x24xf32>
    %c0_33 = arith.constant 0 : index
    %c0_34 = arith.constant 0 : index
    %c0_35 = arith.constant 0 : index
    %94 = vector.load %arg9[%c0_33, %c0_34, %c0_35] : memref<2x8x24xf32, #tpu.memory_space<vmem>>, vector<2x8x24xf32>
    tpu.vector_store %arg9[%c0_33, %c0_34, %c0_35], %93 {strides = array<i32>} : memref<2x8x24xf32, #tpu.memory_space<vmem>>, vector<2x8x24xf32>,
    return
  }
}

</mosaic_0001>

<bundles_post_ra>
// kernel: tpu_custom_call.1
= control target key start
LH: loop header
LB: loop body
LE: loop exit
PB: predicated region body
PF: predicated region fallthrough
CT: control target
= control target key end

     0   :  { %s2044_s0 = inlined_call_operand.vmem [shape: f32[2,4,32], index: 0, kind: input, shape index: {}]   ;;  %s2045_s1 = inlined_call_operand.vmem [shape: f32[20,8], index: 1, kind: input, shape index: {}]   ;;  %s2046_s2 = inlined_call_operand.vmem [shape: f32[1,8], index: 2, kind: input, shape index: {}]   ;;  %s2047_s3 = inlined_call_operand.vmem [shape: f32[40,8], index: 3, kind: input, shape index: {}]   ;;  %s2048_s4 = inlined_call_operand.vmem [shape: f32[24,8], index: 4, kind: input, shape index: {}]   ;;  %s2049_s5 = inlined_call_operand.vmem [shape: f32[1,8], index: 5, kind: input, shape index: {}]   ;;  %s2050_s6 = inlined_call_operand.vmem [shape: f32[1,8], index: 6, kind: input, shape index: {}]   ;;  %s2051_s7 = inlined_call_operand.vmem [shape: f32[1,8], index: 7, kind: input, shape index: {}]   ;;  %s2052_s8 = inlined_call_operand.vmem [shape: f32[1,8], index: 8, kind: input, shape index: {}]   ;;  %s2053_s9 = inlined_call_operand.hbm [shape: f32[2,8,24], index: 9, kind: output, shape index: {}]  }
   0x1   :  { %v33_v0 = vld [vmem:[%s2044_s0] sm:$0xf] }
   0x2   :  { %14 = vsyncpa [#allocation3], 0  ;;  %35 = vxpose.xlu0.b32.start.end [1/1] (short) (narrow) %v33_v0, 32  ;;  %v34_v1 = vld [vmem:[%s2044_s0 + $0x4] sm:$0xf]  ;;  %vm107_vm0 = vcmask 1046528  }
   0x3   :  { %v1515_v4 = vmov 0.0|0.0   ;;  %v313_v5 = vld [vmem:[%s2045_s1] sm:$0xff]  ;;  %v314_v6 = vld [vmem:[%s2045_s1 + $0x8] sm:$0xff]  ;;  %s1516_s0 = smov 4   ;;  %vm146_vm1 = vcmask 1045504   ;;  %vm224_vm2 = vcmask 1043456  }
   0x4   :  { %1413 = vmatprep.subr.bf16.mxu0 %v1515_v4  ;;  %v1414_v9 = vpack.c.bf16 %v314_v6, %v313_v5  ;;  %v315_v14 = vld [vmem:[%s2045_s1 + $0x10] sm:$0xf]  ;;  %v1517_v17 = vmov 0.0   ;;  %s1518_s19 = smov 8   ;;  %vm185_vm3 = vcmask 1044480   ;;  %vm1519_vm4 = vmmov 0  }
   0x5   :  { %1358 = vmatprep.mubr.msk.f32.mxu0 %vm1519_vm4, %v1517_v17  ;;  %s1520_s1 = smov 12   ;;  %s1521_s20 = smov 16   ;;  %vm263_vm5 = vcmask 31744   ;;  %vm272_vm6 = vcmask 64512   ;;  %vm281_vm7 = vcmask 97280   ;;  %vm290_vm8 = vcmask 130048  }
   0x6   :  { %1415 = vmatpush3.bf16.msra.mxu0 %v1414_v9  ;;  %vm330_vm9 = vcmask 162816   ;;  %s1522_s23 = smov 32   ;;  %vm606_vm10 = vcmask 195584   ;;  %vm613_vm11 = vcmask 261120   ;;  %vm625_vm12 = vcmask 326656  }
   0x7   :  { %1356 = vmatprep.subr.mxu0 %v1517_v17  ;;  %vm867_vm13 = vcmask 1040384  }
   0xa   :  { %1357 = vmatpush3.msk.msra.mxu0 %vm224_vm2, %v315_v14 }
   0xf   :  { %67 = vxpose.xlu0.b32.start.end [1/1] (short) (narrow) %v34_v1, 32 }
  0x82   :  { %v1582_v2 = vpop.trf.xlu0 }
  0x83   :  { %v108_v7 = vrot.slane %v1582_v2, 1  ;;  %v147_v13 = vrot.slane %v1582_v2, 2  ;;  %v186_v19 = vrot.slane %v1582_v2, 3  ;;  %v225_v23 = vrot.slane %v1582_v2, 4 }
  0x86   :  { %v1584_v3 = vpop.trf.xlu0 }
  0x87   :  { %v109_v8 = vrot.slane %v1584_v3, 1  ;;  %v148_v11 = vrot.slane %v1584_v3, 2  ;;  %v187_v16 = vrot.slane %v1584_v3, 3  ;;  %v226_v21 = vrot.slane %v1584_v3, 4 }
  0x89   :  { %v110_v10 = vsel %vm107_vm0, %v108_v7, %v109_v8  ;;  %v149_v15 = vsel %vm146_vm1, %v147_v13, %v148_v11  ;;  %v188_v20 = vsel %vm185_vm3, %v186_v19, %v187_v16  ;;  %v227_v24 = vsel %vm224_vm2, %v225_v23, %v226_v21 }
  0x8a   :  { %122 = vrot.lane.b32.xlu1 %v110_v10, %s1516_s0  ;;  %v1597_v12 = vpop.trf.xlu0 }
  0x8b   :  { %v150_v32 = vrot.slane %v1597_v12, 2  ;;  %v111_v44 = vrot.slane %v1597_v12, 1  ;;  %v189_v49 = vrot.slane %v1597_v12, 3  ;;  %v228_v53 = vrot.slane %v1597_v12, 4 }
  0x8d   :  { %v151_v36 = vsel %vm146_vm1, %v148_v11, %v150_v32  ;;  %v112_v47 = vsel %vm107_vm0, %v109_v8, %v111_v44  ;;  %v190_v52 = vsel %vm185_vm3, %v187_v16, %v189_v49  ;;  %v229_v55 = vsel %vm224_vm2, %v226_v21, %v228_v53 }
  0x8e   :  { %161 = vrot.lane.b32.xlu1 %v149_v15, %s1518_s19  ;;  %v1607_v18 = vpop.trf.xlu0 }
  0x8f   :  { %v113_v58 = vrot.slane %v1607_v18, 1  ;;  %v152_v59 = vrot.slane %v1607_v18, 2  ;;  %v191_v60 = vrot.slane %v1607_v18, 3  ;;  %v230_v61 = vrot.slane %v1607_v18, 4 }
  0x91   :  { %v114_v62 = vsel %vm107_vm0, %v111_v44, %v113_v58  ;;  %v153_v63 = vsel %vm146_vm1, %v150_v32, %v152_v59  ;;  %v192_v0 = vsel %vm185_vm3, %v189_v49, %v191_v60  ;;  %v231_v1 = vsel %vm224_vm2, %v228_v53, %v230_v61 }
  0x92   :  { %200 = vrot.lane.b32.xlu1 %v188_v20, %s1520_s1  ;;  %v1616_v22 = vpop.trf.xlu0 }
  0x93   :  { %v232_v26 = vrot.slane %v1616_v22, 4  ;;  %v115_v28 = vrot.slane %v1616_v22, 1  ;;  %v154_v35 = vrot.slane %v1616_v22, 2  ;;  %v193_v40 = vrot.slane %v1616_v22, 3 }
  0x96   :  { %239 = vrot.lane.b32.xlu1 %v227_v24, %s1521_s20  ;;  %v1621_v25 = vpop.trf.xlu0 }
  0x97   :  { %v233_v27 = vrot.slane %v1621_v25, 4  ;;  %v116_v29 = vrot.slane %v1621_v25, 1  ;;  %v155_v33 = vrot.slane %v1621_v25, 2  ;;  %v194_v38 = vrot.slane %v1621_v25, 3 }
  0x99   :  { %v234_v30 = vsel %vm224_vm2, %v232_v26, %v233_v27  ;;  %v117_v31 = vsel %vm107_vm0, %v115_v28, %v116_v29  ;;  %v156_v37 = vsel %vm146_vm1, %v154_v35, %v155_v33  ;;  %v195_v42 = vsel %vm185_vm3, %v193_v40, %v194_v38 }
  0x9a   :  { %247 = vrot.lane.b32.xlu0 %v234_v30, %s1521_s20  ;;  %130 = vrot.lane.b32.xlu1 %v117_v31, %s1516_s0  ;;  %v1633_v34 = vpop.trf.xlu0 }
  0x9b   :  { %v157_v39 = vrot.slane %v1633_v34, 2  ;;  %v235_v45 = vrot.slane %v1633_v34, 4  ;;  %v118_v56 = vrot.slane %v1633_v34, 1  ;;  %v196_v4 = vrot.slane %v1633_v34, 3 }
  0x9d   :  { %v158_v43 = vsel %vm146_vm1, %v155_v33, %v157_v39  ;;  %v236_v48 = vsel %vm224_vm2, %v233_v27, %v235_v45  ;;  %v119_v57 = vsel %vm107_vm0, %v116_v29, %v118_v56  ;;  %v197_v5 = vsel %vm185_vm3, %v194_v38, %v196_v4 }
  0x9e   :  { %163 = vrot.lane.b32.xlu0 %v151_v36, %s1518_s19  ;;  %169 = vrot.lane.b32.xlu1 %v156_v37, %s1518_s19  ;;  %v1643_v41 = vpop.trf.xlu0 }
  0x9f   :  { %v159_v46 = vrot.slane %v1643_v41, 2  ;;  %v237_v51 = vrot.slane %v1643_v41, 4  ;;  %v120_v6 = vrot.slane %v1643_v41, 1  ;;  %v198_v8 = vrot.slane %v1643_v41, 3 }
  0xa1   :  { %v160_v50 = vsel %vm146_vm1, %v157_v39, %v159_v46  ;;  %v238_v54 = vsel %vm224_vm2, %v235_v45, %v237_v51  ;;  %v121_v7 = vsel %vm107_vm0, %v118_v56, %v120_v6  ;;  %v199_v9 = vsel %vm185_vm3, %v196_v4, %v198_v8 }
  0xa2   :  { %208 = vrot.lane.b32.xlu1 %v195_v42, %s1520_s1  ;;  %171 = vrot.lane.b32.xlu0 %v158_v43, %s1518_s19 }
  0xa6   :  { %124 = vrot.lane.b32.xlu1 %v112_v47, %s1516_s0  ;;  %249 = vrot.lane.b32.xlu0 %v236_v48, %s1521_s20 }
  0xaa   :  { %202 = vrot.lane.b32.xlu1 %v190_v52, %s1520_s1  ;;  %173 = vrot.lane.b32.xlu0 %v160_v50, %s1518_s19 }
  0xae   :  { %241 = vrot.lane.b32.xlu1 %v229_v55, %s1521_s20  ;;  %251 = vrot.lane.b32.xlu0 %v238_v54, %s1521_s20 }
  0xb2   :  { %132 = vrot.lane.b32.xlu1 %v119_v57, %s1516_s0  ;;  %175 = vrot.lane.b32.xlu0 %v159_v46, %s1518_s19 }
  0xb6   :  { %128 = vrot.lane.b32.xlu1 %v113_v58, %s1516_s0  ;;  %253 = vrot.lane.b32.xlu0 %v237_v51, %s1521_s20 }
  0xba   :  { %167 = vrot.lane.b32.xlu1 %v152_v59, %s1518_s19 }
  0xbe   :  { %206 = vrot.lane.b32.xlu1 %v191_v60, %s1520_s1 }
  0xc2   :  { %245 = vrot.lane.b32.xlu1 %v230_v61, %s1521_s20 }
  0xc6   :  { %126 = vrot.lane.b32.xlu1 %v114_v62, %s1516_s0 }
  0xca   :  { %165 = vrot.lane.b32.xlu1 %v153_v63, %s1518_s19 }
  0xce   :  { %204 = vrot.lane.b32.xlu1 %v192_v0, %s1520_s1 }
  0xd2   :  { %243 = vrot.lane.b32.xlu1 %v231_v1, %s1521_s20 }
  0xd6   :  { %210 = vrot.lane.b32.xlu1 %v197_v5, %s1520_s1 }
  0xda   :  { %134 = vrot.lane.b32.xlu1 %v121_v7, %s1516_s0 }
  0xde   :  { %212 = vrot.lane.b32.xlu1 %v199_v9, %s1520_s1 }
  0xe2   :  { %136 = vrot.lane.b32.xlu1 %v120_v6, %s1516_s0 }
  0xe6   :  { %214 = vrot.lane.b32.xlu1 %v198_v8, %s1520_s1 }
  0xfc   :  { %v123_v10 = vpop.permute.xlu1 %122 }
  0xfd   :  { %v264_v14 = vsel %vm263_vm5, %v1582_v2, %v123_v10 }
 0x100   :  { %v162_v11 = vpop.permute.xlu1 %161 }
 0x101   :  { %v273_v15 = vsel %vm272_vm6, %v264_v14, %v162_v11 }
 0x104   :  { %v201_v13 = vpop.permute.xlu1 %200 }
 0x105   :  { %v282_v16 = vsel %vm281_vm7, %v273_v15, %v201_v13 }
 0x108   :  { %v240_v19 = vpop.permute.xlu1 %239 }
 0x109   :  { %v291_v20 = vsel %vm290_vm8, %v282_v16, %v240_v19 }
 0x10a   :  { %v307_v21 = vcombine.high %v291_v20, %v291_v20 }
 0x10c   :  { %v323_v23 = vcombine.low %v291_v20, %v307_v21  ;;  %v131_v24 = vpop.permute.xlu1 %130  ;;  %v248_v2 = vpop.permute.xlu0 %247 }
 0x10d   :  { %v268_v54 = vsel %vm263_vm5, %v1616_v22, %v131_v24 }
 0x10e   :  { %1359 = vmatmul.mubr.msk.f32.vlgmr.msra.gmra.mrb[0].mxu0 %vm330_vm9, %v323_v23 }
 0x10f   :  { %1361 = vmatprep.mubr.msk.f32.mxu0 %vm1519_vm4, %v1517_v17 }
 0x110   :  { %v170_v26 = vpop.permute.xlu1 %169  ;;  %v164_v31 = vpop.permute.xlu0 %163 }
 0x114   :  { %v209_v27 = vpop.permute.xlu1 %208  ;;  %v172_v46 = vpop.permute.xlu0 %171 }
 0x118   :  { %v125_v28 = vpop.permute.xlu1 %124  ;;  %v250_v52 = vpop.permute.xlu0 %249 }
 0x119   :  { %v265_v29 = vsel %vm263_vm5, %v1584_v3, %v125_v28 }
 0x11a   :  { %v274_v32 = vsel %vm272_vm6, %v265_v29, %v164_v31 }
 0x11c   :  { %v203_v30 = vpop.permute.xlu1 %202  ;;  %v174_v63 = vpop.permute.xlu0 %173 }
 0x11d   :  { %v283_v33 = vsel %vm281_vm7, %v274_v32, %v203_v30 }
 0x120   :  { %v242_v35 = vpop.permute.xlu1 %241  ;;  %v252_v8 = vpop.permute.xlu0 %251 }
 0x121   :  { %v292_v36 = vsel %vm290_vm8, %v283_v33, %v242_v35 }
 0x122   :  { %v308_v37 = vcombine.high %v292_v36, %v292_v36 }
 0x124   :  { %v324_v38 = vcombine.low %v292_v36, %v308_v37  ;;  %v133_v39 = vpop.permute.xlu1 %132  ;;  %v176_v16 = vpop.permute.xlu0 %175  ;;  %v620_v37 = vld [vmem:[%s2047_s3] sm:$0xff] }
 0x125   :  { %v269_v55 = vsel %vm263_vm5, %v1621_v25, %v133_v39 }
 0x126   :  { %1362 = vmatmul.mubr.msk.f32.gmra.mrb[2].mxu0 %vm330_vm9, %v324_v38  ;;  %v278_v0 = vsel %vm272_vm6, %v269_v55, %v172_v46  ;;  %v621_v38 = vld [vmem:[%s2047_s3 + $0x8] sm:$0xff] }
 0x127   :  { %1364 = vmatprep.mubr.msk.f32.mxu0 %vm1519_vm4, %v1517_v17 }
 0x128   :  { %v129_v40 = vpop.permute.xlu1 %128 }
 0x129   :  { %v267_v56 = vsel %vm263_vm5, %v1607_v18, %v129_v40  ;;  %v1416_v40 = vpack.c.bf16 %v621_v38, %v620_v37 }
 0x12b   :  { %1417 = vmatprep.subr.bf16.mxu1 %v1416_v40 }
 0x12c   :  { %v168_v42 = vpop.permute.xlu1 %167  ;;  %1419 = vmatpush3.bf16.msra.mxu1 %v1416_v40 }
 0x12d   :  { %v276_v58 = vsel %vm272_vm6, %v267_v56, %v168_v42  ;;  %v622_v42 = vld [vmem:[%s2047_s3 + $0x10] sm:$0xff]  ;;  %v624_v56 = vld [vmem:[%s2047_s3 + $0x20] sm:$0xff] }
 0x130   :  { %v207_v3 = vpop.permute.xlu1 %206 }
 0x131   :  { %v285_v60 = vsel %vm281_vm7, %v276_v58, %v207_v3  ;;  %v623_v3 = vld [vmem:[%s2047_s3 + $0x18] sm:$0xff]  ;;  %s1523_s3 = smov 24  }
 0x134   :  { %v246_v43 = vpop.permute.xlu1 %245 }
 0x135   :  { %v294_v22 = vsel %vm290_vm8, %v285_v60, %v246_v43 }
 0x138   :  { %v127_v44 = vpop.permute.xlu1 %126 }
 0x139   :  { %v266_v48 = vsel %vm263_vm5, %v1597_v12, %v127_v44  ;;  %v277_v12 = vsel %vm272_vm6, %v268_v54, %v170_v26  ;;  %v254_v26 = vpop.permute.xlu0 %253 }
 0x13a   :  { %v286_v59 = vsel %vm281_vm7, %v277_v12, %v209_v27 }
 0x13b   :  { %v295_v18 = vsel %vm290_vm8, %v286_v59, %v248_v2 }
 0x13c   :  { %v166_v45 = vpop.permute.xlu1 %165  ;;  %v326_v1 = vcombine.low %v294_v22, %v295_v18  ;;  %v310_v7 = vcombine.high %v295_v18, %v295_v18 }
 0x13d   :  { %v275_v49 = vsel %vm272_vm6, %v266_v48, %v166_v45  ;;  %v1420_v45 = vpack.c.bf16 %v623_v3, %v622_v42 }
 0x13f   :  { %1421 = vmatprep.subr.bf16.mxu1 %v1420_v45 }
 0x140   :  { %v205_v47 = vpop.permute.xlu1 %204  ;;  %1423 = vmatpush3.bf16.msra.mxu1 %v1420_v45 }
 0x141   :  { %v284_v50 = vsel %vm281_vm7, %v275_v49, %v205_v47  ;;  %1387 = vmatprep.subr.mxu1 %v624_v56 }
 0x144   :  { %v244_v51 = vpop.permute.xlu1 %243  ;;  %1388 = vmatpush3.msra.mxu1 %v624_v56 }
 0x145   :  { %v293_v53 = vsel %vm290_vm8, %v284_v50, %v244_v51 }
 0x146   :  { %v309_v57 = vcombine.high %v293_v53, %v293_v53 }
 0x148   :  { %v325_v61 = vcombine.low %v293_v53, %v309_v57  ;;  %v211_v62 = vpop.permute.xlu1 %210 }
 0x149   :  { %v287_v25 = vsel %vm281_vm7, %v278_v0, %v211_v62 }
 0x14a   :  { %1365 = vmatmul.mubr.msk.f32.gmra.mrb[4].mxu0 %vm330_vm9, %v325_v61  ;;  %v296_v5 = vsel %vm290_vm8, %v287_v25, %v250_v52 }
 0x14b   :  { %1367 = vmatprep.mubr.msk.f32.mxu0 %vm1519_vm4, %v1517_v17  ;;  %v327_v9 = vcombine.low %v310_v7, %v296_v5  ;;  %v311_v13 = vcombine.high %v296_v5, %v296_v5 }
 0x14c   :  { %v135_v4 = vpop.permute.xlu1 %134 }
 0x14d   :  { %v270_v6 = vsel %vm263_vm5, %v1633_v34, %v135_v4 }
 0x14e   :  { %1368 = vmatmul.mubr.msk.f32.gmra.mrb[6].mxu0 %vm330_vm9, %v326_v1  ;;  %v279_v11 = vsel %vm272_vm6, %v270_v6, %v174_v63 }
 0x14f   :  { %1370 = vmatprep.mubr.msk.f32.mxu0 %vm1519_vm4, %v1517_v17 }
 0x150   :  { %v213_v10 = vpop.permute.xlu1 %212 }
 0x151   :  { %v288_v14 = vsel %vm281_vm7, %v279_v11, %v213_v10 }
 0x152   :  { %v297_v15 = vsel %vm290_vm8, %v288_v14, %v252_v8  ;;  %1371 = vmatmul.mubr.msk.f32.gmra.mrb[8].mxu0 %vm330_vm9, %v327_v9 }
 0x153   :  { %v328_v34 = vcombine.low %v311_v13, %v297_v15  ;;  %1373 = vmatprep.mubr.msk.f32.mxu0 %vm1519_vm4, %v1517_v17  ;;  %v312_v24 = vcombine.high %v297_v15, %v297_v15 }
 0x154   :  { %v137_v19 = vpop.permute.xlu1 %136 }
 0x155   :  { %v271_v20 = vsel %vm263_vm5, %v1643_v41, %v137_v19  ;;  %v1761_v41 = vld [vmem:[%s2046_s2] ss:$0 sm:$0xff] }
 0x156   :  { %1374 = vmatmul.mubr.msk.f32.gmra.mrb[10].mxu0 %vm330_vm9, %v328_v34  ;;  %v280_v23 = vsel %vm272_vm6, %v271_v20, %v176_v16 }
 0x157   :  { %1376 = vmatprep.mubr.msk.f32.mxu0 %vm1519_vm4, %v1517_v17 }
 0x158   :  { %v215_v21 = vpop.permute.xlu1 %214 }
 0x159   :  { %v289_v27 = vsel %vm281_vm7, %v280_v23, %v215_v21 }
 0x15a   :  { %v298_v2 = vsel %vm290_vm8, %v289_v27, %v254_v26 }
 0x15b   :  { %v329_v28 = vcombine.low %v312_v24, %v298_v2 }
 0x15d   :  { %1377 = vmatmul.mubr.msk.f32.gmra.mrb[12].mxu0 %vm330_vm9, %v329_v28 }
 0x1e1   :  { %v414_v29 = vpop.f32.mrb[0].mxu0 }
 0x1e2   :  { %v1360_v30 = vpop.f32.mrb[1].mxu0  ;;  %v415_v17 = vadd.f32 %v1761_v41, %v414_v29 }
 0x1e4   :  { %v455_v32 = vcombine.high %v415_v17, %v415_v17 }
 0x1e6   :  { %v1781_v48 = vcombine.low %v415_v17, %v455_v32 }
 0x1e8   :  { %v474_v57 = vrot.slane %v1781_v48, 1  ;;  %v506_v18 = vrot.slane %v1781_v48, 2  ;;  %v538_v13 = vrot.slane %v1781_v48, 3 }
 0x1f9   :  { %v419_v31 = vpop.f32.mrb[2].mxu0 }
 0x1fa   :  { %v420_v33 = vadd.f32 %v1761_v41, %v419_v31  ;;  %v1363_v35 = vpop.f32.mrb[3].mxu0 }
 0x1fc   :  { %v570_v36 = vcombine.low %v455_v32, %v420_v33  ;;  %v456_v39 = vcombine.high %v420_v33, %v420_v33 }
 0x1fe   :  { %576 = vrot.lane.b32.xlu1 %v570_v36, %s1522_s23  ;;  %v1778_v43 = vcombine.low %v420_v33, %v456_v39 }
 0x200   :  { %v475_v52 = vrot.slane %v1778_v43, 1  ;;  %v507_v60 = vrot.slane %v1778_v43, 2  ;;  %v539_v6 = vrot.slane %v1778_v43, 3 }
 0x202   :  { %v476_v59 = vsel %vm107_vm0, %v474_v57, %v475_v52  ;;  %v508_v5 = vsel %vm146_vm1, %v506_v18, %v507_v60  ;;  %v540_v15 = vsel %vm185_vm3, %v538_v13, %v539_v6 }
 0x21d   :  { %v424_v44 = vpop.f32.mrb[4].mxu0 }
 0x21e   :  { %v425_v46 = vadd.f32 %v1761_v41, %v424_v44  ;;  %v1366_v47 = vpop.f32.mrb[5].mxu0 }
 0x220   :  { %v457_v49 = vcombine.high %v425_v46, %v425_v46  ;;  %v571_v50 = vcombine.low %v456_v39, %v425_v46 }
 0x221   :  { %v429_v51 = vpop.f32.mrb[6].mxu0 }
 0x222   :  { %v1784_v53 = vcombine.low %v425_v46, %v457_v49  ;;  %v430_v54 = vadd.f32 %v1761_v41, %v429_v51  ;;  %578 = vrot.lane.b32.xlu1 %v571_v50, %s1522_s23  ;;  %v1369_v55 = vpop.f32.mrb[7].mxu0 }
 0x224   :  { %v477_v12 = vrot.slane %v1784_v53, 1  ;;  %v572_v61 = vcombine.low %v457_v49, %v430_v54  ;;  %v458_v63 = vcombine.high %v430_v54, %v430_v54  ;;  %v509_v25 = vrot.slane %v1784_v53, 2 }
 0x225   :  { %v434_v58 = vpop.f32.mrb[8].mxu0  ;;  %v541_v11 = vrot.slane %v1784_v53, 3  ;;  %v479_v34 = vrot.slane %v430_v54, 1  ;;  %v511_v24 = vrot.slane %v430_v54, 2  ;;  %v543_v30 = vrot.slane %v430_v54, 3 }
 0x226   :  { %v435_v62 = vadd.f32 %v1761_v41, %v434_v58  ;;  %488 = vrot.lane.b32.xlu1 %v476_v59, %s1518_s19  ;;  %v1372_v22 = vpop.f32.mrb[9].mxu0  ;;  %v478_v0 = vsel %vm107_vm0, %v475_v52, %v477_v12  ;;  %v510_v10 = vsel %vm146_vm1, %v507_v60, %v509_v25 }
 0x227   :  { %490 = vrot.lane.b32.xlu0 %v478_v0, %s1518_s19  ;;  %v542_v16 = vsel %vm185_vm3, %v539_v6, %v541_v11  ;;  %v480_v26 = vsel %vm107_vm0, %v477_v12, %v479_v34  ;;  %v512_v29 = vsel %vm146_vm1, %v509_v25, %v511_v24  ;;  %v544_v32 = vsel %vm185_vm3, %v541_v11, %v543_v30 }
 0x228   :  { %v1801_v1 = vcombine.low %v458_v63, %v435_v62  ;;  %v459_v7 = vcombine.high %v435_v62, %v435_v62 }
 0x229   :  { %v439_v4 = vpop.f32.mrb[10].mxu0 }
 0x22a   :  { %v440_v8 = vadd.f32 %v1761_v41, %v439_v4  ;;  %520 = vrot.lane.b32.xlu1 %v508_v5, %s1521_s20  ;;  %v1375_v9 = vpop.f32.mrb[11].mxu0  ;;  %v481_v28 = vrot.slane %v1801_v1, 1  ;;  %v513_v31 = vrot.slane %v1801_v1, 2  ;;  %v573_v36 = vcombine.low %v435_v62, %v459_v7 }
 0x22b   :  { %522 = vrot.lane.b32.xlu0 %v510_v10, %s1521_s20  ;;  %v545_v37 = vrot.slane %v1801_v1, 3 }
 0x22c   :  { %v1811_v14 = vcombine.low %v459_v7, %v440_v8  ;;  %v460_v20 = vcombine.high %v440_v8, %v440_v8 }
 0x22e   :  { %552 = vrot.lane.b32.xlu1 %v540_v15, %s1523_s3  ;;  %v482_v27 = vrot.slane %v1811_v14, 1  ;;  %v514_v17 = vrot.slane %v1811_v14, 2  ;;  %v546_v35 = vrot.slane %v1811_v14, 3  ;;  %v574_v51 = vcombine.low %v440_v8, %v460_v20 }
 0x22f   :  { %554 = vrot.lane.b32.xlu0 %v542_v16, %s1523_s3 }
 0x230   :  { %v444_v19 = vpop.f32.mrb[12].mxu0  ;;  %v515_v33 = vsel %vm146_vm1, %v513_v31, %v514_v17  ;;  %v547_v40 = vsel %vm185_vm3, %v545_v37, %v546_v35 }
 0x231   :  { %v445_v21 = vadd.f32 %v1761_v41, %v444_v19  ;;  %v1378_v23 = vpop.f32.mrb[13].mxu0  ;;  %v483_v41 = vsel %vm107_vm0, %v481_v28, %v482_v27 }
 0x232   :  { %580 = vrot.lane.b32.xlu1 %v572_v61, %s1522_s23 }
 0x233   :  { %v1821_v2 = vcombine.low %v460_v20, %v445_v21  ;;  %492 = vrot.lane.b32.xlu0 %v480_v26, %s1518_s19  ;;  %v461_v39 = vcombine.high %v445_v21, %v445_v21 }
 0x235   :  { %v516_v38 = vrot.slane %v1821_v2, 2  ;;  %v484_v42 = vrot.slane %v1821_v2, 1  ;;  %v548_v44 = vrot.slane %v1821_v2, 3  ;;  %v486_v46 = vrot.slane %v461_v39, 1 }
 0x236   :  { %524 = vrot.lane.b32.xlu1 %v512_v29, %s1521_s20  ;;  %v518_v50 = vrot.slane %v461_v39, 2  ;;  %v550_v54 = vrot.slane %v461_v39, 3  ;;  %v575_v56 = vcombine.low %v445_v21, %v461_v39 }
 0x237   :  { %494 = vrot.lane.b32.xlu0 %v483_v41, %s1518_s19  ;;  %v517_v3 = vsel %vm146_vm1, %v514_v17, %v516_v38  ;;  %v485_v45 = vsel %vm107_vm0, %v482_v27, %v484_v42  ;;  %v549_v47 = vsel %vm185_vm3, %v546_v35, %v548_v44  ;;  %v487_v49 = vsel %vm107_vm0, %v484_v42, %v486_v46 }
 0x238   :  { %v519_v52 = vsel %vm146_vm1, %v516_v38, %v518_v50  ;;  %v551_v55 = vsel %vm185_vm3, %v548_v44, %v550_v54 }
 0x23a   :  { %556 = vrot.lane.b32.xlu1 %v544_v32, %s1523_s3 }
 0x23b   :  { %526 = vrot.lane.b32.xlu0 %v515_v33, %s1521_s20 }
 0x23e   :  { %582 = vrot.lane.b32.xlu1 %v573_v36, %s1522_s23 }
 0x23f   :  { %558 = vrot.lane.b32.xlu0 %v547_v40, %s1523_s3 }
 0x242   :  { %528 = vrot.lane.b32.xlu1 %v517_v3, %s1521_s20 }
 0x243   :  { %496 = vrot.lane.b32.xlu0 %v485_v45, %s1518_s19 }
 0x246   :  { %560 = vrot.lane.b32.xlu1 %v549_v47, %s1523_s3 }
 0x247   :  { %498 = vrot.lane.b32.xlu0 %v487_v49, %s1518_s19 }
 0x24a   :  { %584 = vrot.lane.b32.xlu1 %v574_v51, %s1522_s23 }
 0x24b   :  { %530 = vrot.lane.b32.xlu0 %v519_v52, %s1521_s20 }
 0x24f   :  { %562 = vrot.lane.b32.xlu0 %v551_v55, %s1523_s3 }
 0x253   :  { %586 = vrot.lane.b32.xlu0 %v575_v56, %s1522_s23 }
 0x270   :  { %v577_v57 = vpop.permute.xlu1 %576 }
 0x294   :  { %v579_v12 = vpop.permute.xlu1 %578 }
 0x298   :  { %v489_v58 = vpop.permute.xlu1 %488 }
 0x299   :  { %v491_v59 = vpop.permute.xlu0 %490  ;;  %v594_v62 = vsel %vm272_vm6, %v1781_v48, %v489_v58 }
 0x29a   :  { %v595_v63 = vsel %vm272_vm6, %v1778_v43, %v491_v59 }
 0x29c   :  { %v521_v60 = vpop.permute.xlu1 %520 }
 0x29d   :  { %v523_v61 = vpop.permute.xlu0 %522  ;;  %v600_v22 = vsel %vm290_vm8, %v594_v62, %v521_v60 }
 0x29e   :  { %v601_v25 = vsel %vm290_vm8, %v595_v63, %v523_v61 }
 0x2a0   :  { %v553_v0 = vpop.permute.xlu1 %552 }
 0x2a1   :  { %v607_v18 = vsel %vm606_vm10, %v600_v22, %v553_v0  ;;  %v555_v4 = vpop.permute.xlu0 %554 }
 0x2a2   :  { %v608_v5 = vsel %vm606_vm10, %v601_v25, %v555_v4  ;;  %v614_v6 = vsel %vm613_vm11, %v607_v18, %v577_v57 }
 0x2a3   :  { %1389 = vmatprep.mubr.msk.f32.mxu1 %vm625_vm12, %v614_v6  ;;  %v615_v48 = vsel %vm613_vm11, %v608_v5, %v579_v12 }
 0x2a4   :  { %v581_v7 = vpop.permute.xlu1 %580  ;;  %1390 = vmatmul.mubr.msk.f32.vlgmr.msra.gmra.mrb[0].mxu1 %vm625_vm12, %v615_v48 }
 0x2a5   :  { %v493_v43 = vpop.permute.xlu0 %492 }
 0x2a6   :  { %v596_v10 = vsel %vm272_vm6, %v1784_v53, %v493_v43 }
 0x2a8   :  { %v525_v8 = vpop.permute.xlu1 %524 }
 0x2a9   :  { %v495_v9 = vpop.permute.xlu0 %494  ;;  %v602_v11 = vsel %vm290_vm8, %v596_v10, %v525_v8 }
 0x2aa   :  { %v597_v19 = vsel %vm272_vm6, %v1801_v1, %v495_v9 }
 0x2ac   :  { %v557_v13 = vpop.permute.xlu1 %556 }
 0x2ad   :  { %v609_v15 = vsel %vm606_vm10, %v602_v11, %v557_v13  ;;  %v527_v16 = vpop.permute.xlu0 %526 }
 0x2ae   :  { %v616_v34 = vsel %vm613_vm11, %v609_v15, %v581_v7  ;;  %v603_v21 = vsel %vm290_vm8, %v597_v19, %v527_v16 }
 0x2af   :  { %1392 = vmatprep.mubr.msk.f32.mxu1 %vm625_vm12, %v616_v34 }
 0x2b0   :  { %v583_v20 = vpop.permute.xlu1 %582 }
 0x2b1   :  { %v559_v23 = vpop.permute.xlu0 %558 }
 0x2b2   :  { %v610_v24 = vsel %vm606_vm10, %v603_v21, %v559_v23 }
 0x2b3   :  { %v617_v53 = vsel %vm613_vm11, %v610_v24, %v583_v20 }
 0x2b4   :  { %v529_v26 = vpop.permute.xlu1 %528  ;;  %1393 = vmatmul.mubr.msk.f32.gmra.mrb[2].mxu1 %vm625_vm12, %v617_v53 }
 0x2b5   :  { %v497_v27 = vpop.permute.xlu0 %496 }
 0x2b6   :  { %v598_v28 = vsel %vm272_vm6, %v1811_v14, %v497_v27 }
 0x2b7   :  { %v604_v30 = vsel %vm290_vm8, %v598_v28, %v529_v26 }
 0x2b8   :  { %v561_v29 = vpop.permute.xlu1 %560 }
 0x2b9   :  { %v499_v41 = vpop.permute.xlu0 %498  ;;  %v611_v1 = vsel %vm606_vm10, %v604_v30, %v561_v29 }
 0x2ba   :  { %v599_v35 = vsel %vm272_vm6, %v1821_v2, %v499_v41 }
 0x2bc   :  { %v585_v17 = vpop.permute.xlu1 %584 }
 0x2bd   :  { %v618_v31 = vsel %vm613_vm11, %v611_v1, %v585_v17  ;;  %v531_v32 = vpop.permute.xlu0 %530  ;;  %v796_v17 = vlaneseq }
 0x2be   :  { %1395 = vmatprep.mubr.msk.f32.mxu1 %vm625_vm12, %v618_v31  ;;  %v605_v36 = vsel %vm290_vm8, %v599_v35, %v531_v32  ;;  %v788_v32 = vld [vmem:[%s2049_s5] sm:$0x1] }
 0x2bf   :  { %v797_v31 = vshrl.u32 %v796_v17, 7 }
 0x2c1   :  { %v563_v33 = vpop.permute.xlu0 %562 }
 0x2c2   :  { %v612_v14 = vsel %vm606_vm10, %v605_v36, %v563_v33  ;;  %v1924_v33 = vsub.s32 0, %v797_v31 }
 0x2c5   :  { %v587_v37 = vpop.permute.xlu0 %586 }
 0x2c6   :  { %v619_v38 = vsel %vm613_vm11, %v612_v14, %v587_v37  ;;  %v792_v14 = vld [vmem:[%s2050_s6] sm:$0x1] }
 0x2c7   :  { %1396 = vmatmul.mubr.msk.f32.gmra.mrb[4].mxu1 %vm625_vm12, %v619_v38 }
 0x377   :  { %v1893_v39 = vpop.f32.mrb[0].mxu1 }
 0x378   :  { %v740_v40 = vsel %vm272_vm6, %v1893_v39, 0.0  ;;  %v1897_v42 = vpop.f32.mrb[1].mxu1 }
 0x379   :  { %v739_v3 = vsel %vm272_vm6, %v1897_v42, 0.0 }
 0x37a   :  { %v741_v2 = vadd.f32 %v740_v40, %v739_v3 }
 0x387   :  { %v1901_v44 = vpop.f32.mrb[2].mxu1 }
 0x388   :  { %v1903_v45 = vpop.f32.mrb[3].mxu1  ;;  %v744_v49 = vsel %vm272_vm6, %v1901_v44, 0.0 }
 0x389   :  { %v742_v46 = vsel %vm272_vm6, %v1903_v45, 0.0 }
 0x38a   :  { %v743_v47 = vadd.f32 %v742_v46, %v741_v2 }
 0x38c   :  { %v745_v50 = vadd.f32 %v744_v49, %v743_v47 }
 0x39a   :  { %v1397_v51 = vpop.f32.mrb[4].mxu1 }
 0x39b   :  { %v730_v52 = vpop.f32.mrb[5].mxu1  ;;  %v748_v56 = vsel %vm272_vm6, %v1397_v51, 0.0 }
 0x39c   :  { %v746_v54 = vsel %vm272_vm6, %v730_v52, 0.0 }
 0x39d   :  { %v747_v55 = vadd.f32 %v746_v54, %v745_v50 }
 0x39f   :  { %v749_v57 = vadd.f32 %v748_v56, %v747_v55 }
 0x3a1   :  { %v750_v12 = vrot.slane %v749_v57, 4 }
 0x3a3   :  { %v751_v58 = vadd.f32 %v750_v12, %v749_v57 }
 0x3a5   :  { %v752_v59 = vrot.slane %v751_v58, 2 }
 0x3a7   :  { %v753_v60 = vadd.f32 %v752_v59, %v751_v58 }
 0x3a9   :  { %v754_v61 = vrot.slane %v753_v60, 1 }
 0x3ab   :  { %v755_v62 = vadd.f32 %v754_v61, %v753_v60 }
 0x3ad   :  { %v757_v63 = vmul.f32 0.020833334, %v755_v62 }
 0x3af   :  { %v758_v22 = vsub.f32 %v1897_v42, %v757_v63  ;;  %v759_v0 = vsub.f32 %v1893_v39, %v757_v63  ;;  %v760_v25 = vsub.f32 %v1903_v45, %v757_v63  ;;  %v761_v18 = vsub.f32 %v1901_v44, %v757_v63 }
 0x3b0   :  { %v762_v4 = vsub.f32 %v730_v52, %v757_v63  ;;  %v763_v5 = vsub.f32 %v1397_v51, %v757_v63 }
 0x3b1   :  { %v764_v6 = vmul.f32 %v758_v22, %v758_v22  ;;  %v765_v48 = vmul.f32 %v759_v0, %v759_v0  ;;  %v766_v7 = vmul.f32 %v760_v25, %v760_v25  ;;  %v767_v43 = vmul.f32 %v761_v18, %v761_v18 }
 0x3b2   :  { %v768_v11 = vmul.f32 %v762_v4, %v762_v4  ;;  %v769_v16 = vmul.f32 %v763_v5, %v763_v5 }
 0x3b3   :  { %v770_v8 = vsel %vm272_vm6, %v764_v6, 0.0  ;;  %v771_v9 = vsel %vm272_vm6, %v765_v48, 0.0  ;;  %v773_v13 = vsel %vm272_vm6, %v766_v7, 0.0  ;;  %v775_v34 = vsel %vm272_vm6, %v767_v43, 0.0  ;;  %v970_v7 = vld [vmem:[%s2048_s4] sm:$0xff]  ;;  %v971_v43 = vld [vmem:[%s2048_s4 + $0x8] sm:$0xff] }
 0x3b4   :  { %v772_v10 = vadd.f32 %v771_v9, %v770_v8  ;;  %v777_v20 = vsel %vm272_vm6, %v768_v11, 0.0  ;;  %v779_v23 = vsel %vm272_vm6, %v769_v16, 0.0  ;;  %v1424_v9 = vpack.c.bf16 %v971_v43, %v970_v7 }
 0x3b6   :  { %v774_v15 = vadd.f32 %v773_v13, %v772_v10  ;;  %1425 = vmatprep.subr.bf16.mxu1 %v1424_v9 }
 0x3b7   :  { %1427 = vmatpush3.bf16.msra.mxu1 %v1424_v9 }
 0x3b8   :  { %v776_v19 = vadd.f32 %v775_v34, %v774_v15 }
 0x3ba   :  { %v778_v21 = vadd.f32 %v777_v20, %v776_v19  ;;  %v972_v19 = vld [vmem:[%s2048_s4 + $0x10] sm:$0xff] }
 0x3bb   :  { %1402 = vmatprep.subr.mxu1 %v972_v19 }
 0x3bc   :  { %v780_v24 = vadd.f32 %v779_v23, %v778_v21  ;;  %1403 = vmatpush3.msra.mxu1 %v972_v19 }
 0x3be   :  { %v781_v53 = vrot.slane %v780_v24, 4 }
 0x3c0   :  { %v782_v26 = vadd.f32 %v781_v53, %v780_v24 }
 0x3c2   :  { %v783_v27 = vrot.slane %v782_v26, 2 }
 0x3c4   :  { %v784_v28 = vadd.f32 %v783_v27, %v782_v26 }
 0x3c6   :  { %v785_v29 = vrot.slane %v784_v28, 1 }
 0x3c8   :  { %v786_v30 = vadd.f32 %v785_v29, %v784_v28 }
 0x3ca   :  { %v787_v41 = vmul.f32 0.020833334, %v786_v30 }
 0x3cc   :  { %v789_v1 = vadd.f32 1e-05, %v787_v41 }
 0x3ce   :  { %1439 = vrsqrt.f32 %v789_v1 }
 0x3d8   :  { %v1440_v35 = vpop.eup %1439 }
 0x3d9   :  { %v791_v36 = vmul.f32 %v1440_v35, %v788_v32 }
 0x3db   :  { %v793_v37 = vmul.f32 %v791_v36, %v757_v63  ;;  %v799_v38 = vrot.slane %v791_v36, %v1924_v33 }
 0x3dd   :  { %v794_v40 = vsub.f32 %v792_v14, %v793_v37  ;;  %v805_v3 = vmul.f32 %v799_v38, %v730_v52  ;;  %v801_v2 = vmul.f32 %v799_v38, %v1897_v42  ;;  %v802_v46 = vmul.f32 %v1893_v39, %v799_v38 }
 0x3de   :  { %v803_v47 = vmul.f32 %v799_v38, %v1903_v45  ;;  %v804_v49 = vmul.f32 %v1901_v44, %v799_v38  ;;  %v806_v50 = vmul.f32 %v1397_v51, %v799_v38 }
 0x3df   :  { %v811_v54 = vrot.slane %v794_v40, %v1924_v33 }
 0x3e1   :  { %v817_v55 = vadd.f32 %v811_v54, %v805_v3  ;;  %v813_v56 = vadd.f32 %v811_v54, %v801_v2  ;;  %v814_v57 = vadd.f32 %v811_v54, %v802_v46  ;;  %v815_v12 = vadd.f32 %v811_v54, %v803_v47 }
 0x3e2   :  { %v816_v58 = vadd.f32 %v811_v54, %v804_v49  ;;  %v818_v59 = vadd.f32 %v811_v54, %v806_v50 }
 0x3e3   :  { %v1308_v60 = vmul.f32 -1.442695, %v817_v55  ;;  %v1304_v61 = vmul.f32 -1.442695, %v813_v56  ;;  %v1305_v52 = vmul.f32 -1.442695, %v814_v57 }
 0x3e4   :  { %v1306_v62 = vmul.f32 -1.442695, %v815_v12  ;;  %v1307_v42 = vmul.f32 -1.442695, %v816_v58  ;;  %v1309_v39 = vmul.f32 -1.442695, %v818_v59 }
 0x3e5   :  { %1441 = vpow2.f32 %v1308_v60 }
 0x3e6   :  { %1443 = vpow2.f32 %v1304_v61 }
 0x3e7   :  { %1445 = vpow2.f32 %v1305_v52 }
 0x3e8   :  { %1447 = vpow2.f32 %v1306_v62 }
 0x3e9   :  { %1449 = vpow2.f32 %v1307_v42 }
 0x3ea   :  { %1451 = vpow2.f32 %v1309_v39 }
 0x3ef   :  { %v1442_v44 = vpop.eup %1441 }
 0x3f0   :  { %v1444_v45 = vpop.eup %1443  ;;  %v841_v51 = vadd.f32 1.0, %v1442_v44 }
 0x3f1   :  { %v1446_v63 = vpop.eup %1445  ;;  %v837_v22 = vadd.f32 1.0, %v1444_v45 }
 0x3f2   :  { %v1448_v0 = vpop.eup %1447  ;;  %1453 = vrcp.f32 %v841_v51  ;;  %v838_v25 = vadd.f32 1.0, %v1446_v63 }
 0x3f3   :  { %v1450_v18 = vpop.eup %1449  ;;  %v839_v4 = vadd.f32 1.0, %v1448_v0  ;;  %1455 = vrcp.f32 %v837_v22 }
 0x3f4   :  { %v1452_v5 = vpop.eup %1451  ;;  %1457 = vrcp.f32 %v838_v25  ;;  %v840_v6 = vadd.f32 1.0, %v1450_v18 }
 0x3f5   :  { %1459 = vrcp.f32 %v839_v4  ;;  %v842_v48 = vadd.f32 1.0, %v1452_v5 }
 0x3f6   :  { %1461 = vrcp.f32 %v840_v6 }
 0x3f7   :  { %1463 = vrcp.f32 %v842_v48 }
 0x3fc   :  { %v1454_v8 = vpop.eup %1453 }
 0x3fd   :  { %v1456_v10 = vpop.eup %1455  ;;  %v859_v11 = vmul.f32 %v1454_v8, %v817_v55 }
 0x3fe   :  { %v1458_v13 = vpop.eup %1457  ;;  %v855_v15 = vmul.f32 %v1456_v10, %v813_v56 }
 0x3ff   :  { %v1460_v16 = vpop.eup %1459  ;;  %v856_v34 = vmul.f32 %v1458_v13, %v814_v57  ;;  %v874_v53 = vrot.slane %v859_v11, 7 }
 0x400   :  { %v1462_v20 = vpop.eup %1461  ;;  %v857_v21 = vmul.f32 %v1460_v16, %v815_v12  ;;  %v868_v23 = vrot.slane %v855_v15, 7 }
 0x401   :  { %v1464_v24 = vpop.eup %1463  ;;  %v869_v26 = vrot.slane %v856_v34, 7  ;;  %v858_v27 = vmul.f32 %v1462_v20, %v816_v58 }
 0x402   :  { %v871_v28 = vrot.slane %v857_v21, 7  ;;  %v886_v29 = vsel %vm867_vm13, 0.0, %v868_v23  ;;  %v860_v32 = vmul.f32 %v1464_v24, %v818_v59 }
 0x403   :  { %v870_v30 = vsel %vm867_vm13, %v868_v23, %v869_v26  ;;  %v894_v41 = vrot.slane %v886_v29, 1  ;;  %v873_v1 = vrot.slane %v858_v27, 7  ;;  %v926_v38 = vrot.slane %v886_v29, 2 }
 0x404   :  { %v872_v17 = vsel %vm867_vm13, %v869_v26, %v871_v28  ;;  %v895_v31 = vrot.slane %v870_v30, 1  ;;  %v927_v37 = vrot.slane %v870_v30, 2  ;;  %v888_v2 = vsel %vm867_vm13, %v871_v28, 0.0 }
 0x405   :  { %v897_v35 = vrot.slane %v872_v17, 1  ;;  %v1948_v36 = vsel %vm867_vm13, %v873_v1, %v874_v53  ;;  %v929_v3 = vrot.slane %v872_v17, 2  ;;  %v887_v46 = vsel %vm867_vm13, 0.0, %v873_v1 }
 0x406   :  { %v896_v14 = vsel %vm107_vm0, %v894_v41, %v895_v31  ;;  %v876_v47 = vrot.slane %v860_v32, 7  ;;  %v928_v49 = vsel %vm146_vm1, %v926_v38, %v927_v37  ;;  %v899_v50 = vrot.slane %v888_v2, 1 }
 0x407   :  { %v898_v40 = vsel %vm107_vm0, %v895_v31, %v897_v35  ;;  %908 = vrot.lane.b32.xlu1 %v896_v14, %s1518_s19  ;;  %v930_v55 = vsel %vm146_vm1, %v927_v37, %v929_v3  ;;  %v901_v56 = vrot.slane %v887_v46, 1  ;;  %v902_v57 = vrot.slane %v1948_v36, 1 }
 0x408   :  { %910 = vrot.lane.b32.xlu0 %v898_v40, %s1518_s19  ;;  %v877_v54 = vsel %vm867_vm13, %v874_v53, %v876_v47  ;;  %v900_v12 = vsel %vm107_vm0, %v897_v35, %v899_v50  ;;  %v931_v58 = vrot.slane %v888_v2, 2  ;;  %v933_v60 = vrot.slane %v887_v46, 2 }
 0x409   :  { %v903_v59 = vsel %vm107_vm0, %v901_v56, %v902_v57  ;;  %v934_v61 = vrot.slane %v1948_v36, 2  ;;  %v889_v52 = vsel %vm867_vm13, %v876_v47, 0.0  ;;  %v904_v42 = vrot.slane %v877_v54, 1 }
 0x40a   :  { %v932_v62 = vsel %vm146_vm1, %v929_v3, %v931_v58  ;;  %v906_v44 = vrot.slane %v889_v52, 1  ;;  %v936_v51 = vrot.slane %v877_v54, 2  ;;  %v938_v22 = vrot.slane %v889_v52, 2 }
 0x40b   :  { %940 = vrot.lane.b32.xlu1 %v928_v49, %s1521_s20  ;;  %v935_v39 = vsel %vm146_vm1, %v933_v60, %v934_v61  ;;  %v905_v45 = vsel %vm107_vm0, %v902_v57, %v904_v42 }
 0x40c   :  { %942 = vrot.lane.b32.xlu0 %v930_v55, %s1521_s20  ;;  %v907_v63 = vsel %vm107_vm0, %v904_v42, %v906_v44  ;;  %v937_v0 = vsel %vm146_vm1, %v934_v61, %v936_v51  ;;  %v939_v25 = vsel %vm146_vm1, %v936_v51, %v938_v22 }
 0x40f   :  { %912 = vrot.lane.b32.xlu1 %v900_v12, %s1518_s19 }
 0x410   :  { %914 = vrot.lane.b32.xlu0 %v903_v59, %s1518_s19 }
 0x413   :  { %944 = vrot.lane.b32.xlu1 %v932_v62, %s1521_s20 }
 0x414   :  { %946 = vrot.lane.b32.xlu0 %v935_v39, %s1521_s20 }
 0x417   :  { %916 = vrot.lane.b32.xlu1 %v905_v45, %s1518_s19 }
 0x418   :  { %918 = vrot.lane.b32.xlu0 %v907_v63, %s1518_s19 }
 0x41b   :  { %948 = vrot.lane.b32.xlu1 %v937_v0, %s1521_s20 }
 0x41c   :  { %950 = vrot.lane.b32.xlu0 %v939_v25, %s1521_s20 }
 0x479   :  { %v909_v18 = vpop.permute.xlu1 %908 }
 0x47a   :  { %v911_v4 = vpop.permute.xlu0 %910  ;;  %v958_v5 = vsel %vm272_vm6, %v886_v29, %v909_v18 }
 0x47b   :  { %v959_v48 = vsel %vm272_vm6, %v870_v30, %v911_v4 }
 0x47d   :  { %v941_v6 = vpop.permute.xlu1 %940 }
 0x47e   :  { %v943_v7 = vpop.permute.xlu0 %942  ;;  %v964_v43 = vsel %vm290_vm8, %v958_v5, %v941_v6 }
 0x47f   :  { %v965_v8 = vsel %vm290_vm8, %v959_v48, %v943_v7  ;;  %1404 = vmatprep.mubr.msk.f32.mxu1 %vm606_vm10, %v964_v43 }
 0x480   :  { %1405 = vmatmul.mubr.msk.f32.vlgmr.msra.gmra.mrb[6].mxu1 %vm606_vm10, %v965_v8 }
 0x481   :  { %v913_v9 = vpop.permute.xlu1 %912 }
 0x482   :  { %v915_v10 = vpop.permute.xlu0 %914  ;;  %v960_v11 = vsel %vm272_vm6, %v872_v17, %v913_v9 }
 0x483   :  { %v961_v15 = vsel %vm272_vm6, %v887_v46, %v915_v10 }
 0x485   :  { %v945_v13 = vpop.permute.xlu1 %944 }
 0x486   :  { %v947_v16 = vpop.permute.xlu0 %946  ;;  %v966_v34 = vsel %vm290_vm8, %v960_v11, %v945_v13 }
 0x487   :  { %v967_v19 = vsel %vm290_vm8, %v961_v15, %v947_v16  ;;  %1407 = vmatprep.mubr.msk.f32.mxu1 %vm606_vm10, %v966_v34 }
 0x488   :  { %1408 = vmatmul.mubr.msk.f32.gmra.mrb[8].mxu1 %vm606_vm10, %v967_v19 }
 0x489   :  { %v917_v20 = vpop.permute.xlu1 %916 }
 0x48a   :  { %v919_v21 = vpop.permute.xlu0 %918  ;;  %v962_v23 = vsel %vm272_vm6, %v1948_v36, %v917_v20  ;;  %v1134_v20 = vld [vmem:[%s2051_s7] sm:$0x1]  ;;  %s1524_s7 = smov [#allocation2]  }
 0x48b   :  { %v963_v53 = vsel %vm272_vm6, %v877_v54, %v919_v21 }
 0x48d   :  { %v949_v24 = vpop.permute.xlu1 %948 }
 0x48e   :  { %v951_v26 = vpop.permute.xlu0 %950  ;;  %v968_v27 = vsel %vm290_vm8, %v962_v23, %v949_v24  ;;  %v1138_v24 = vld [vmem:[%s2052_s8] sm:$0x1]  ;;  %s1278_s8 = sshll.u32 %s1524_s7, 4  ;;  %s1279_s8 = int_to_ptr.vmem [resolvable:$true] %s1278_s8 }
 0x48f   :  { %v969_v28 = vsel %vm290_vm8, %v963_v53, %v951_v26  ;;  %1410 = vmatprep.mubr.msk.f32.mxu1 %vm606_vm10, %v968_v27  ;;  %s1491_s22 = scalar_lea.vmem %s1279_s8, 256  ;;  %p1496_p1 = scmp.lt.s32.totalorder %s1279_s8, %s1279_s8 }
 0x490   :  { %1411 = vmatmul.mubr.msk.f32.gmra.mrb[10].mxu1 %vm606_vm10, %v969_v28  ;;  %p1492_p0 = scmp.ne.s32.totalorder %s1279_s8, %s1491_s22  ;;  %p1497_p2 = scmp.lt.s32.totalorder %s1491_s22, %s1491_s22 }
 0x492   :  { %p1498_p3 = por %p1497_p2, %p1496_p1 }
 0x494   :  { %p1499_p4 = pnand %p1498_p3, %p1492_p0 }
 0x553   :  { %v1999_v29 = vpop.f32.mrb[6].mxu1 }
 0x554   :  { %v1087_v30 = vsel %vm272_vm6, %v1999_v29, 0.0  ;;  %v2003_v41 = vpop.f32.mrb[7].mxu1 }
 0x555   :  { %v1086_v1 = vsel %vm272_vm6, %v2003_v41, 0.0 }
 0x556   :  { %v1088_v17 = vadd.f32 %v1087_v30, %v1086_v1 }
 0x55b   :  { %v1409_v31 = vpop.f32.mrb[8].mxu1 }
 0x55c   :  { %v1067_v32 = vpop.f32.mrb[9].mxu1  ;;  %v1091_v14 = vsel %vm272_vm6, %v1409_v31, 0.0 }
 0x55d   :  { %v1089_v35 = vsel %vm272_vm6, %v1067_v32, 0.0 }
 0x55e   :  { %v1090_v36 = vadd.f32 %v1089_v35, %v1088_v17 }
 0x560   :  { %v1092_v37 = vadd.f32 %v1091_v14, %v1090_v36 }
 0x563   :  { %v1412_v38 = vpop.f32.mrb[10].mxu1 }
 0x564   :  { %v1077_v40 = vpop.f32.mrb[11].mxu1  ;;  %v1095_v46 = vsel %vm272_vm6, %v1412_v38, 0.0 }
 0x565   :  { %v1093_v3 = vsel %vm272_vm6, %v1077_v40, 0.0 }
 0x566   :  { %v1094_v2 = vadd.f32 %v1093_v3, %v1092_v37 }
 0x568   :  { %v1096_v47 = vadd.f32 %v1095_v46, %v1094_v2 }
 0x56a   :  { %v1097_v49 = vrot.slane %v1096_v47, 4 }
 0x56c   :  { %v1098_v50 = vadd.f32 %v1097_v49, %v1096_v47 }
 0x56e   :  { %v1099_v54 = vrot.slane %v1098_v50, 2 }
 0x570   :  { %v1100_v55 = vadd.f32 %v1099_v54, %v1098_v50 }
 0x572   :  { %v1101_v56 = vrot.slane %v1100_v55, 1 }
 0x574   :  { %v1102_v57 = vadd.f32 %v1101_v56, %v1100_v55 }
 0x576   :  { %v1103_v12 = vmul.f32 0.020833334, %v1102_v57 }
 0x578   :  { %v1104_v58 = vsub.f32 %v2003_v41, %v1103_v12  ;;  %v1105_v59 = vsub.f32 %v1999_v29, %v1103_v12  ;;  %v1106_v60 = vsub.f32 %v1067_v32, %v1103_v12  ;;  %v1107_v61 = vsub.f32 %v1409_v31, %v1103_v12 }
 0x579   :  { %v1108_v52 = vsub.f32 %v1077_v40, %v1103_v12  ;;  %v1109_v62 = vsub.f32 %v1412_v38, %v1103_v12 }
 0x57a   :  { %v1110_v42 = vmul.f32 %v1104_v58, %v1104_v58  ;;  %v1111_v39 = vmul.f32 %v1105_v59, %v1105_v59  ;;  %v1112_v44 = vmul.f32 %v1106_v60, %v1106_v60  ;;  %v1113_v45 = vmul.f32 %v1107_v61, %v1107_v61 }
 0x57b   :  { %v1114_v0 = vmul.f32 %v1108_v52, %v1108_v52  ;;  %v1115_v4 = vmul.f32 %v1109_v62, %v1109_v62 }
 0x57c   :  { %v1116_v51 = vsel %vm272_vm6, %v1110_v42, 0.0  ;;  %v1117_v63 = vsel %vm272_vm6, %v1111_v39, 0.0  ;;  %v1119_v25 = vsel %vm272_vm6, %v1112_v44, 0.0  ;;  %v1121_v5 = vsel %vm272_vm6, %v1113_v45, 0.0 }
 0x57d   :  { %v1118_v22 = vadd.f32 %v1117_v63, %v1116_v51  ;;  %v1123_v48 = vsel %vm272_vm6, %v1114_v0, 0.0  ;;  %v1125_v43 = vsel %vm272_vm6, %v1115_v4, 0.0 }
 0x57f   :  { %v1120_v18 = vadd.f32 %v1119_v25, %v1118_v22 }
 0x581   :  { %v1122_v6 = vadd.f32 %v1121_v5, %v1120_v18 }
 0x583   :  { %v1124_v7 = vadd.f32 %v1123_v48, %v1122_v6 }
 0x585   :  { %v1126_v8 = vadd.f32 %v1125_v43, %v1124_v7 }
 0x587   :  { %v1127_v9 = vrot.slane %v1126_v8, 4 }
 0x589   :  { %v1128_v10 = vadd.f32 %v1127_v9, %v1126_v8 }
 0x58b   :  { %v1129_v11 = vrot.slane %v1128_v10, 2 }
 0x58d   :  { %v1130_v13 = vadd.f32 %v1129_v11, %v1128_v10 }
 0x58f   :  { %v1131_v15 = vrot.slane %v1130_v13, 1 }
 0x591   :  { %v1132_v16 = vadd.f32 %v1131_v15, %v1130_v13 }
 0x593   :  { %v1133_v34 = vmul.f32 0.020833334, %v1132_v16 }
 0x595   :  { %v1135_v19 = vadd.f32 1e-05, %v1133_v34 }
 0x597   :  { %1465 = vrsqrt.f32 %v1135_v19 }
 0x5a1   :  { %v1466_v21 = vpop.eup %1465 }
 0x5a2   :  { %v1137_v23 = vmul.f32 %v1466_v21, %v1134_v20 }
 0x5a4   :  { %v1139_v53 = vmul.f32 %v1137_v23, %v1103_v12  ;;  %v1145_v26 = vrot.slane %v1137_v23, %v1924_v33 }
 0x5a6   :  { %v1140_v27 = vsub.f32 %v1138_v24, %v1139_v53  ;;  %v1151_v28 = vmul.f32 %v1145_v26, %v1077_v40  ;;  %v1150_v30 = vmul.f32 %v1409_v31, %v1145_v26  ;;  %v1147_v1 = vmul.f32 %v1145_v26, %v2003_v41 }
 0x5a7   :  { %v1148_v17 = vmul.f32 %v1999_v29, %v1145_v26  ;;  %v1152_v35 = vmul.f32 %v1412_v38, %v1145_v26  ;;  %v1149_v36 = vmul.f32 %v1145_v26, %v1067_v32 }
 0x5a8   :  { %v1157_v14 = vrot.slane %v1140_v27, %v1924_v33 }
 0x5aa   :  { %v1163_v37 = vadd.f32 %v1157_v14, %v1151_v28  ;;  %v1162_v3 = vadd.f32 %v1157_v14, %v1150_v30  ;;  %v1159_v2 = vadd.f32 %v1157_v14, %v1147_v1  ;;  %v1160_v46 = vadd.f32 %v1157_v14, %v1148_v17 }
 0x5ab   :  { %v1164_v47 = vadd.f32 %v1157_v14, %v1152_v35  ;;  %v1161_v49 = vadd.f32 %v1157_v14, %v1149_v36 }
 0x5ac   :  { %v1320_v50 = vmul.f32 -1.442695, %v1163_v37  ;;  %v1319_v54 = vmul.f32 -1.442695, %v1162_v3  ;;  %v1316_v55 = vmul.f32 -1.442695, %v1159_v2 }
 0x5ad   :  { %v1317_v56 = vmul.f32 -1.442695, %v1160_v46  ;;  %v1321_v31 = vmul.f32 -1.442695, %v1164_v47  ;;  %v1318_v41 = vmul.f32 -1.442695, %v1161_v49 }
 0x5ae   :  { %1467 = vpow2.f32 %v1320_v50 }
 0x5af   :  { %1469 = vpow2.f32 %v1319_v54 }
 0x5b0   :  { %1471 = vpow2.f32 %v1316_v55 }
 0x5b1   :  { %1473 = vpow2.f32 %v1317_v56 }
 0x5b2   :  { %1475 = vpow2.f32 %v1321_v31 }
 0x5b3   :  { %1477 = vpow2.f32 %v1318_v41 }
 0x5b8   :  { %v1468_v29 = vpop.eup %1467 }
 0x5b9   :  { %v1470_v33 = vpop.eup %1469  ;;  %v1187_v38 = vadd.f32 1.0, %v1468_v29 }
 0x5ba   :  { %v1472_v32 = vpop.eup %1471  ;;  %v1186_v40 = vadd.f32 1.0, %v1470_v33 }
 0x5bb   :  { %v1474_v57 = vpop.eup %1473  ;;  %v1183_v12 = vadd.f32 1.0, %v1472_v32 }
 0x5bc   :  { %v1476_v58 = vpop.eup %1475  ;;  %1479 = vrcp.f32 %v1186_v40  ;;  %v1184_v59 = vadd.f32 1.0, %v1474_v57 }
 0x5bd   :  { %v1478_v60 = vpop.eup %1477  ;;  %1481 = vrcp.f32 %v1183_v12  ;;  %v1188_v61 = vadd.f32 1.0, %v1476_v58 }
 0x5be   :  { %1483 = vrcp.f32 %v1187_v38  ;;  %v1185_v52 = vadd.f32 1.0, %v1478_v60 }
 0x5bf   :  { %1485 = vrcp.f32 %v1184_v59 }
 0x5c0   :  { %1487 = vrcp.f32 %v1188_v61 }
 0x5c1   :  { %1489 = vrcp.f32 %v1185_v52 }
 0x5c6   :  { %v1480_v62 = vpop.eup %1479 }
 0x5c7   :  { %v1482_v42 = vpop.eup %1481  ;;  %v1204_v39 = vmul.f32 %v1480_v62, %v1162_v3 }
 0x5c8   :  { %v1484_v44 = vpop.eup %1483  ;;  %v1201_v45 = vmul.f32 %v1482_v42, %v1159_v2 }
 0x5c9   :  { %v1486_v51 = vpop.eup %1485  ;;  %1239 = vxpose.xlu0.b32.start [1/3] (short) (narrow) %v1204_v39, 8  ;;  %v1205_v63 = vmul.f32 %v1484_v44, %v1163_v37 }
 0x5ca   :  { %1207 = vxpose.xlu1.b32.start [1/3] (short) (narrow) %v1201_v45, 8  ;;  %v1488_v22 = vpop.eup %1487  ;;  %v1202_v0 = vmul.f32 %v1486_v51, %v1160_v46 }
 0x5cb   :  { %v1490_v25 = vpop.eup %1489  ;;  %v1206_v18 = vmul.f32 %v1488_v22, %v1164_v47 }
 0x5cc   :  { %v1203_v4 = vmul.f32 %v1490_v25, %v1161_v49 }
 0x5cd   :  { %1240 = vxpose.xlu0.b32.cont [2/3] (short) (narrow) %v1205_v63, 8 }
 0x5ce   :  { %1208 = vxpose.xlu1.b32.cont [2/3] (short) (narrow) %v1202_v0, 8 }
 0x5d1   :  { %1241 = vxpose.xlu0.b32.end [3/3] (short) (narrow) %v1206_v18, 8 }
 0x5d2   :  { %1209 = vxpose.xlu1.b32.end [3/3] (short) (narrow) %v1203_v4, 8 }
 0x649   :  { %v1255_v5 = vpop.trf.xlu0 }
 0x64a   :  { %1272 = vst.msk [vmem:[#allocation2 + $0x8] sm:$0xff] %vm606_vm10, %v1255_v5  ;;  %v1223_v6 = vpop.trf.xlu1 }
 0x64b   :  { %1271 = vst.msk [vmem:[#allocation2] sm:$0xff] %vm606_vm10, %v1223_v6 }
 0x64c   :  { %1502 = shalt.err (!%p1499_p4)
}
 0x64d   :  { %s1503_s25 = scalar_lea.hbm %s2053_s9, 256 }
 0x64e   :  { %p1504_p5 = scmp.ne.s32.totalorder %s2053_s9, %s1503_s25  ;;  %p1507_p6 = scmp.lt.u32.totalorder %s1503_s25, %s2053_s9 }
 0x650   :  { %p1509_p7 = pnand %p1507_p6, %p1504_p5 }
 0x652   :  { %1512 = shalt.err (!%p1509_p7)
}
 0x653   :  { %s1525_s29 = smov 128  }
 0x654   :  { %1284 = dma.vmem_to_hbm [thread:$0]  %s1279_s8, 256, %s2053_s9, [#allocation3], %s1525_s29, %s1525_s29, %s1518_s19  }
 0x655   :  { %1513 = dma.done.wait [#allocation3], 256  }
 0x656   :  { %1514 = vsyncadd [#allocation3], 4294967040 }
 0x657   :  { %1288 = vsyncpa [#allocation3], 1 }

</bundles_post_ra>
